<compile_context>
chip_gen: v5e
topology: v5e:2x2
jax: 0.10.0
libtpu: 0.0.40
codegen_flags: <defaults>
</compile_context>

<pallas_src>
import functools
import math

import jax
import jax.numpy as jnp
from jax.experimental import pallas as pl
from jax.experimental.pallas import tpu as pltpu


# ---------------------------------------------------------------------------
# Helpers
# ---------------------------------------------------------------------------
def _head_group_size(num_heads, head_dim):
    """Heads per group so each context-scratch write is 128-lane aligned."""
    if head_dim % 128 == 0:
        return 1
    if 128 % head_dim == 0 and num_heads % (128 // head_dim) == 0:
        return 128 // head_dim
    return num_heads  # single full-width write (covers small-H configs)


@functools.lru_cache(maxsize=None)
def _buffered_single_supported():
    """Probe whether pipeline_mode=pl.Buffered(1) lowers on this jax/libtpu."""
    if not hasattr(pl, "Buffered"):
        return False

    def _copy(x_ref, o_ref):
        o_ref[...] = x_ref[...]

    try:
        fn = pl.pallas_call(
            _copy,
            out_shape=jax.ShapeDtypeStruct((8, 128), jnp.float32),
            grid=(2,),
            in_specs=[pl.BlockSpec((8, 128), lambda i: (0, 0),
                                   pipeline_mode=pl.Buffered(1))],
            out_specs=pl.BlockSpec((8, 128), lambda i: (0, 0)),
        )
        jax.block_until_ready(fn(jnp.zeros((8, 128), jnp.float32)))
        return True
    except Exception:  # capability probe only; real call path never relies on this
        return False


@functools.lru_cache(maxsize=None)
def _vmem_limit_bytes():
    """Derive a safe VMEM budget from the chip (v7x: 64 MiB/TC; v5e/v6e: 128 MiB)."""
    cap = 128 * 1024 * 1024
    try:
        cap = int(getattr(pltpu.get_tpu_info(), "vmem_capacity_bytes", cap))
    except Exception:
        pass
    return max(32 * 1024 * 1024, min(96 * 1024 * 1024, int(cap * 0.6)))


# ---------------------------------------------------------------------------
# Kernel
# ---------------------------------------------------------------------------
def bert_layer_kernel(h_ref, bias_ref,
                      wqkv_ref, bqkv_ref,
                      wo_ref, bo_ref, g1_ref, beta1_ref,
                      wi_ref, bi_ref, w2_ref, b2_ref, g2_ref, beta2_ref,
                      out_ref,
                      *scratch,
                      num_heads, head_dim, eps, block_q, use_kv_scratch):
    _, S, H = h_ref.shape
    TQ = block_q
    bf16 = jnp.bfloat16
    f32 = jnp.float32

    if use_kv_scratch:
        kv_scratch, ctx_scratch = scratch
    else:
        (ctx_scratch,) = scratch

    h_full = h_ref[0]                                   # (S, H) bf16
    if TQ == S:
        h_q = h_full                                    # (TQ, H)
    else:
        q_start = pl.multiple_of(pl.program_id(1) * TQ, TQ)
        h_q = h_ref[0, pl.ds(q_start, TQ), :]           # (TQ, H)

    def mm(a, w):
        return jnp.dot(a, w, preferred_element_type=f32)

    # fused QKV weights: (H, 3H) bf16, 1/sqrt(head_dim) already folded into Q cols
    w_qkv = wqkv_ref[...]
    b_qkv = bqkv_ref[...]                               # (1, 3H) f32

    if use_kv_scratch:
        # K/V projected once per batch element (first query tile), cached in VMEM.
        @pl.when(pl.program_id(1) == 0)
        def _():
            kv = mm(h_full, w_qkv[:, H:]) + b_qkv[:, H:]            # (S, 2H) f32
            kv_scratch[...] = kv.astype(bf16)

        q_bf = (mm(h_q, w_qkv[:, :H]) + b_qkv[:, :H]).astype(bf16)  # (TQ, H)
        k_bf = kv_scratch[:, :H]
        v_bf = kv_scratch[:, H:]
    elif TQ == S:
        qkv = mm(h_full, w_qkv) + b_qkv                              # (S, 3H) f32
        q_bf = qkv[:, :H].astype(bf16)
        k_bf = qkv[:, H:2 * H].astype(bf16)
        v_bf = qkv[:, 2 * H:].astype(bf16)
    else:
        # B == 1 with query tiling: keep the qi axis "parallel" (use both v7x TCs)
        # and accept the K/V recompute per tile.
        q_bf = (mm(h_q, w_qkv[:, :H]) + b_qkv[:, :H]).astype(bf16)
        kv = mm(h_full, w_qkv[:, H:]) + b_qkv[:, H:]                 # (S, 2H)
        k_bf = kv[:, :H].astype(bf16)
        v_bf = kv[:, H:].astype(bf16)

    # additive mask bias, broadcast ONCE outside the head loop
    bias = bias_ref[0]                                  # (1 or TQ, S) f32
    bias_b = jnp.broadcast_to(bias, (TQ, S)) if bias.shape[0] == 1 else bias

    # per-head attention; heads grouped so ctx-scratch writes stay lane-aligned
    hpg = _head_group_size(num_heads, head_dim)
    n_groups = num_heads // hpg
    for gi in range(n_groups):
        base = gi * hpg * head_dim
        parts = []
        for hh in range(hpg):
            lo = base + hh * head_dim
            qh = q_bf[:, lo:lo + head_dim]              # (TQ, d)
            kh = k_bf[:, lo:lo + head_dim]              # (S, d)
            vh = v_bf[:, lo:lo + head_dim]              # (S, d)
            # q @ k^T via contracting dims -> no explicit transpose
            s = jax.lax.dot_general(qh, kh, (((1,), (1,)), ((), ())),
                                    preferred_element_type=f32)      # (TQ, S)
            s = s + bias_b
            s = s - jnp.max(s, axis=-1, keepdims=True)
            p = jnp.exp(s)
            inv = pl.reciprocal(jnp.sum(p, axis=-1, keepdims=True), approx=True)
            parts.append(mm((p * inv).astype(bf16), vh))              # (TQ, d) f32
        grp = parts[0] if hpg == 1 else jnp.concatenate(parts, axis=-1)
        ctx_scratch[:, base:base + hpg * head_dim] = grp

    def layer_norm(x, g, b):
        mu = jnp.mean(x, axis=-1, keepdims=True)
        xc = x - mu
        var = jnp.mean(xc * xc, axis=-1, keepdims=True)
        return xc * jax.lax.rsqrt(var + eps) * g + b

    ctx = ctx_scratch[...]                                            # (TQ, H) f32

    # --- BertSelfOutput: dense + residual + LayerNorm -------------------------
    attn = mm(ctx.astype(bf16), wo_ref[...]) + bo_ref[...]
    x1 = layer_norm(attn + h_q.astype(f32), g1_ref[...], beta1_ref[...])  # (TQ, H) f32

    # --- BertIntermediate: dense + exact erf GELU -----------------------------
    inter = mm(x1.astype(bf16), wi_ref[...]) + bi_ref[...]            # (TQ, I) f32
    inter = 0.5 * inter * (1.0 + jax.lax.erf(inter * jnp.float32(1.0 / math.sqrt(2.0))))
    inter = inter.astype(bf16)    # drop the f32 (TQ, I) intermediate before w2 matmul

    # --- BertOutput: dense + residual + LayerNorm -----------------------------
    ffn = mm(inter, w2_ref[...]) + b2_ref[...]                        # (TQ, H) f32
    out_ref[0] = layer_norm(ffn + x1, g2_ref[...], beta2_ref[...]).astype(out_ref.dtype)


# ---------------------------------------------------------------------------
# Per-layer wrapper
# ---------------------------------------------------------------------------
def _bert_layer_call(hidden_states, attn_bias, params, *, num_heads, eps, block_q):
    B, S, H = hidden_states.shape
    I = params['wi_t'].shape[1]
    head_dim = H // num_heads
    TQ = S if block_q is None else min(block_q, S)
    assert S % TQ == 0, "block_q must divide the sequence length"
    Mb = attn_bias.shape[1]          # 1 (key-validity row) or S (full mask)

    # Cache K/V across query tiles (qi axis becomes "arbitrary") except when B == 1,
    # where keeping qi "parallel" keeps both v7x TensorCores busy.
    use_kv_scratch = (TQ < S) and (B > 1)
    single_buffer = _buffered_single_supported()

    def wspec(shape):
        # Weights / LN params are constant over the grid -> single-buffer if possible.
        if single_buffer:
            return pl.BlockSpec(shape, lambda b, qi: (0, 0),
                                pipeline_mode=pl.Buffered(1))
        return pl.BlockSpec(shape, lambda b, qi: (0, 0))

    if Mb == 1:
        bias_spec = pl.BlockSpec((1, 1, S), lambda b, qi: (b, 0, 0))
    else:
        bias_spec = pl.BlockSpec((1, TQ, S), lambda b, qi: (b, qi, 0))

    in_specs = [
        pl.BlockSpec((1, S, H), lambda b, qi: (b, 0, 0)),   # hidden (K/V + residual src)
        bias_spec,                                          # additive attention bias
        wspec((H, 3 * H)), wspec((1, 3 * H)),               # fused QKV weight / bias
        wspec((H, H)), wspec((1, H)),                       # output proj
        wspec((1, H)), wspec((1, H)),                       # LN1 gamma / beta
        wspec((H, I)), wspec((1, I)),                       # intermediate
        wspec((I, H)), wspec((1, H)),                       # FFN output
        wspec((1, H)), wspec((1, H)),                       # LN2 gamma / beta
    ]

    scratch_shapes = []
    if use_kv_scratch:
        scratch_shapes.append(pltpu.VMEM((S, 2 * H), jnp.bfloat16))   # cached K/V
    scratch_shapes.append(pltpu.VMEM((TQ, H), jnp.float32))           # per-head ctx

    kernel = functools.partial(bert_layer_kernel,
                               num_heads=num_heads, head_dim=head_dim, eps=eps,
                               block_q=TQ, use_kv_scratch=use_kv_scratch)

    qi_sem = "arbitrary" if use_kv_scratch else "parallel"

    return pl.pallas_call(
        kernel,
        out_shape=jax.ShapeDtypeStruct((B, S, H), jnp.bfloat16),      # bf16 activations
        grid=(B, S // TQ),
        in_specs=in_specs,
        out_specs=pl.BlockSpec((1, TQ, H), lambda b, qi: (b, qi, 0)),
        scratch_shapes=scratch_shapes,
        compiler_params=pltpu.CompilerParams(
            dimension_semantics=("parallel", qi_sem),
            vmem_limit_bytes=_vmem_limit_bytes()),
    )(hidden_states, attn_bias,
      params['w_qkv'], params['b_qkv'],
      params['wo_t'], params['bo'], params['g1'], params['beta1'],
      params['wi_t'], params['bi'], params['w2_t'], params['b2'],
      params['g2'], params['beta2'])


def bert_layer_pallas(hidden_states, attn_bias, params, *, num_heads, eps, block_q=None):
    return _bert_layer_call(hidden_states, attn_bias, params,
                            num_heads=num_heads, eps=eps, block_q=block_q)


# ---------------------------------------------------------------------------
# Encoder wrapper (mirrors BertEncoder.forward)
# ---------------------------------------------------------------------------
def bert_encoder_pallas(hidden_states, attention_mask, layer_params, *,
                        num_heads, eps, block_q=None):
    """Returns (last_hidden_states, all_hidden_states) like BertEncoder.forward.

    attention_mask: float 1/0 keep-mask, either (B, S) key-validity rows or the
    full (B, S, S) mask from the PyTorch module.  Converted once on the host to
    an additive bias (-1e9 where masked), matching masked_fill(-1e9) + softmax.
    Inter-layer activations are bf16; math inside the kernel stays f32 where it
    matters (softmax, residuals, LayerNorm).
    """
    B, S, _ = hidden_states.shape
    if attention_mask is None:
        attn_bias = jnp.zeros((B, 1, S), jnp.float32)
    else:
        m = attention_mask
        if m.ndim == 2:
            m = m[:, None, :]                                   # (B, 1, S)
        attn_bias = jnp.where(m == 0, jnp.float32(-1e9),
                              jnp.float32(0.0)).astype(jnp.float32)

    all_hidden_states = [hidden_states]
    x = hidden_states.astype(jnp.bfloat16)
    for params in layer_params:
        x = bert_layer_pallas(x, attn_bias, params,
                              num_heads=num_heads, eps=eps, block_q=block_q)
        all_hidden_states.append(x)
    return x, all_hidden_states


# ---------------------------------------------------------------------------
# Parameters
# ---------------------------------------------------------------------------
def init_layer_params(key, hidden_size, intermediate_size):
    """PyTorch-layout params: nn.Linear weights stored (out_features, in_features)."""
    ks = jax.random.split(key, 8)
    scale = 0.02
    H, I = hidden_size, intermediate_size
    normal = lambda k, shape: scale * jax.random.normal(k, shape, dtype=jnp.float32)
    return {
        'wq': normal(ks[0], (H, H)), 'bq': jnp.zeros((1, H), jnp.float32),
        'wk': normal(ks[1], (H, H)), 'bk': jnp.zeros((1, H), jnp.float32),
        'wv': normal(ks[2], (H, H)), 'bv': jnp.zeros((1, H), jnp.float32),
        'wo': normal(ks[3], (H, H)), 'bo': jnp.zeros((1, H), jnp.float32),
        'g1': jnp.ones((1, H), jnp.float32), 'beta1': jnp.zeros((1, H), jnp.float32),
        'wi': normal(ks[4], (I, H)), 'bi': jnp.zeros((1, I), jnp.float32),
        'w2': normal(ks[5], (H, I)), 'b2': jnp.zeros((1, H), jnp.float32),
        'g2': jnp.ones((1, H), jnp.float32), 'beta2': jnp.zeros((1, H), jnp.float32),
    }


def prepare_layer_params(raw, num_heads, compute_dtype=jnp.bfloat16):
    """Host-side prep: pre-transpose to (in, out), fuse QKV, fold 1/sqrt(d) into Q,
    cast matmul weights to bf16.  Head packing along H matches transpose_for_scores."""
    f32 = jnp.float32
    H = raw['wq'].shape[0]
    head_dim = H // num_heads
    scale = jnp.float32(1.0 / math.sqrt(head_dim))
    wq_t = raw['wq'].T * scale                       # fold attention scale into Q
    bq = raw['bq'] * scale
    w_qkv = jnp.concatenate([wq_t, raw['wk'].T, raw['wv'].T], axis=1)   # (H, 3H)
    b_qkv = jnp.concatenate([bq, raw['bk'], raw['bv']], axis=1)         # (1, 3H)
    return {
        'w_qkv': w_qkv.astype(compute_dtype), 'b_qkv': b_qkv.astype(f32),
        'wo_t': raw['wo'].T.astype(compute_dtype), 'bo': raw['bo'].astype(f32),
        'g1': raw['g1'].astype(f32), 'beta1': raw['beta1'].astype(f32),
        'wi_t': raw['wi'].T.astype(compute_dtype), 'bi': raw['bi'].astype(f32),
        'w2_t': raw['w2'].T.astype(compute_dtype), 'b2': raw['b2'].astype(f32),
        'g2': raw['g2'].astype(f32), 'beta2': raw['beta2'].astype(f32),
    }


# ---------------------------------------------------------------------------
# Demo
# ---------------------------------------------------------------------------
if __name__ == "__main__":
    # Small synthetic config consistent with the module.
    B, S, H = 2, 8, 32
    NUM_HEADS = 4
    INTERMEDIATE = 64
    NUM_LAYERS = 2
    EPS = 1e-12

    root = jax.random.PRNGKey(0)
    k_h, k_layers = jax.random.split(root)

    hidden_states = jax.random.normal(k_h, (B, S, H), dtype=jnp.float32)

    # Padding-style attention mask as compact key-validity rows (B, S):
    # batch 0 attends to all 8 keys, batch 1 to the first 6.
    lengths = jnp.array([8, 6])
    attention_mask = (jnp.arange(S)[None, :] < lengths[:, None]).astype(jnp.float32)

    layer_keys = jax.random.split(k_layers, NUM_LAYERS)
    layer_params = [prepare_layer_params(init_layer_params(k, H, INTERMEDIATE),
                                         num_heads=NUM_HEADS)
                    for k in layer_keys]

    last, all_hs = bert_encoder_pallas(hidden_states, attention_mask, layer_params,
                                       num_heads=NUM_HEADS, eps=EPS)
    jax.block_until_ready(last)
    for h in all_hs:
        jax.block_until_ready(h)

    assert last.shape == (B, S, H)
    assert len(all_hs) == NUM_LAYERS + 1
    assert bool(jnp.all(jnp.isfinite(last.astype(jnp.float32))))
    print("KERNEL_OK")
</pallas_src>

<mosaic_0001>
module attributes {stable_mosaic.version = 11 : i64} {
  func.func @_copy(%arg0: i32, %arg1: memref<8x128xf32, #tpu.memory_space<vmem>>, %arg2: memref<8x128xf32, #tpu.memory_space<vmem>>) attributes {dimension_semantics = [#tpu.dimension_semantics<arbitrary>], iteration_bounds = array<i64: 2>, scalar_prefetch = 0 : i64, scratch_operands = 0 : i64, tpu.core_type = #tpu.core_type<tc>, window_params = [{pipeline_mode = #tpu.pipeline_mode<synchronous>, transform_indices = @transform_0, window_bounds = array<i64: 8, 128>}, {pipeline_mode = #tpu.pipeline_mode<synchronous>, transform_indices = @transform_1, window_bounds = array<i64: 8, 128>}]} {
    %c0 = arith.constant 0 : index
    %c0_0 = arith.constant 0 : index
    %0 = vector.load %arg1[%c0, %c0_0] : memref<8x128xf32, #tpu.memory_space<vmem>>, vector<8x128xf32>
    %c0_1 = arith.constant 0 : index
    %c0_2 = arith.constant 0 : index
    %1 = vector.load %arg2[%c0_1, %c0_2] : memref<8x128xf32, #tpu.memory_space<vmem>>, vector<8x128xf32>
    tpu.vector_store %arg2[%c0_1, %c0_2], %0 {strides = array<i32>} : memref<8x128xf32, #tpu.memory_space<vmem>>, vector<8x128xf32>,
    return
  }
  func.func @transform_0(%arg0: i32) -> (i32, i32) {
    %c0_i32 = arith.constant 0 : i32
    %c0_i32_0 = arith.constant 0 : i32
    %c0_i32_1 = arith.constant 0 : i32
    return %c0_i32, %c0_i32_0 : i32, i32
  }
  func.func @transform_1(%arg0: i32) -> (i32, i32) {
    %c0_i32 = arith.constant 0 : i32
    %c0_i32_0 = arith.constant 0 : i32
    %c0_i32_1 = arith.constant 0 : i32
    return %c0_i32, %c0_i32_0 : i32, i32
  }
}

module attributes {stable_mosaic.version = 11 : i64} {
  func.func @bert_layer_kernel(%arg0: i32, %arg1: i32, %arg2: memref<1x8x32xbf16, #tpu.memory_space<vmem>>, %arg3: memref<1x1x8xf32, #tpu.memory_space<vmem>>, %arg4: memref<32x96xbf16, #tpu.memory_space<vmem>>, %arg5: memref<1x96xf32, #tpu.memory_space<vmem>>, %arg6: memref<32x32xbf16, #tpu.memory_space<vmem>>, %arg7: memref<1x32xf32, #tpu.memory_space<vmem>>, %arg8: memref<1x32xf32, #tpu.memory_space<vmem>>, %arg9: memref<1x32xf32, #tpu.memory_space<vmem>>, %arg10: memref<32x64xbf16, #tpu.memory_space<vmem>>, %arg11: memref<1x64xf32, #tpu.memory_space<vmem>>, %arg12: memref<64x32xbf16, #tpu.memory_space<vmem>>, %arg13: memref<1x32xf32, #tpu.memory_space<vmem>>, %arg14: memref<1x32xf32, #tpu.memory_space<vmem>>, %arg15: memref<1x32xf32, #tpu.memory_space<vmem>>, %arg16: memref<1x8x32xbf16, #tpu.memory_space<vmem>>, %arg17: memref<8x32xf32, #tpu.memory_space<vmem>>) attributes {dimension_semantics = [#tpu.dimension_semantics<parallel>, #tpu.dimension_semantics<parallel>], iteration_bounds = array<i64: 2, 1>, scalar_prefetch = 0 : i64, scratch_operands = 1 : i64, tpu.core_type = #tpu.core_type<tc>, window_params = [{transform_indices = @transform_0, window_bounds = array<i64: 1, 8, 32>}, {transform_indices = @transform_1, window_bounds = array<i64: 1, 1, 8>}, {pipeline_mode = #tpu.pipeline_mode<synchronous>, transform_indices = @transform_2, window_bounds = array<i64: 32, 96>}, {pipeline_mode = #tpu.pipeline_mode<synchronous>, transform_indices = @transform_3, window_bounds = array<i64: 1, 96>}, {pipeline_mode = #tpu.pipeline_mode<synchronous>, transform_indices = @transform_4, window_bounds = array<i64: 32, 32>}, {pipeline_mode = #tpu.pipeline_mode<synchronous>, transform_indices = @transform_5, window_bounds = array<i64: 1, 32>}, {pipeline_mode = #tpu.pipeline_mode<synchronous>, transform_indices = @transform_6, window_bounds = array<i64: 1, 32>}, {pipeline_mode = #tpu.pipeline_mode<synchronous>, transform_indices = @transform_7, window_bounds = array<i64: 1, 32>}, {pipeline_mode = #tpu.pipeline_mode<synchronous>, transform_indices = @transform_8, window_bounds = array<i64: 32, 64>}, {pipeline_mode = #tpu.pipeline_mode<synchronous>, transform_indices = @transform_9, window_bounds = array<i64: 1, 64>}, {pipeline_mode = #tpu.pipeline_mode<synchronous>, transform_indices = @transform_10, window_bounds = array<i64: 64, 32>}, {pipeline_mode = #tpu.pipeline_mode<synchronous>, transform_indices = @transform_11, window_bounds = array<i64: 1, 32>}, {pipeline_mode = #tpu.pipeline_mode<synchronous>, transform_indices = @transform_12, window_bounds = array<i64: 1, 32>}, {pipeline_mode = #tpu.pipeline_mode<synchronous>, transform_indices = @transform_13, window_bounds = array<i64: 1, 32>}, {transform_indices = @transform_14, window_bounds = array<i64: 1, 8, 32>}]} {
    %c0 = arith.constant 0 : index
    %c0_0 = arith.constant 0 : index
    %c0_1 = arith.constant 0 : index
    %0 = vector.load %arg2[%c0, %c0_0, %c0_1] : memref<1x8x32xbf16, #tpu.memory_space<vmem>>, vector<1x8x32xbf16>
    %1 = vector.shape_cast %0 : vector<1x8x32xbf16> to vector<8x32xbf16>
    %c0_2 = arith.constant 0 : index
    %c0_3 = arith.constant 0 : index
    %2 = vector.load %arg4[%c0_2, %c0_3] : memref<32x96xbf16, #tpu.memory_space<vmem>>, vector<32x96xbf16>
    %c0_4 = arith.constant 0 : index
    %c0_5 = arith.constant 0 : index
    %3 = vector.load %arg5[%c0_4, %c0_5] : memref<1x96xf32, #tpu.memory_space<vmem>>, vector<1x96xf32>
    %cst = arith.constant dense<0.000000e+00> : vector<8x96xf32>
    %4 = tpu.matmul %1, %2, %cst {dimension_numbers = #tpu.dot_dimension_numbers<[1], [0], [0], [1], [0, 0, 1, 1], [], []>} : vector<8x32xbf16>, vector<32x96xbf16>, vector<8x96xf32> -> vector<8x96xf32>
    %5 = vector.broadcast %3 : vector<1x96xf32> to vector<8x96xf32>
    %6 = arith.addf %4, %5 : vector<8x96xf32>
    %7 = vector.extract_strided_slice %6 {offsets = [0, 0], sizes = [8, 32], strides = [1, 1]} : vector<8x96xf32> to vector<8x32xf32>
    %8 = arith.truncf %7 : vector<8x32xf32> to vector<8x32xbf16>
    %9 = vector.extract_strided_slice %6 {offsets = [0, 32], sizes = [8, 32], strides = [1, 1]} : vector<8x96xf32> to vector<8x32xf32>
    %10 = arith.truncf %9 : vector<8x32xf32> to vector<8x32xbf16>
    %11 = vector.extract_strided_slice %6 {offsets = [0, 64], sizes = [8, 32], strides = [1, 1]} : vector<8x96xf32> to vector<8x32xf32>
    %12 = arith.truncf %11 : vector<8x32xf32> to vector<8x32xbf16>
    %c0_6 = arith.constant 0 : index
    %c0_7 = arith.constant 0 : index
    %c0_8 = arith.constant 0 : index
    %13 = vector.load %arg3[%c0_6, %c0_7, %c0_8] : memref<1x1x8xf32, #tpu.memory_space<vmem>>, vector<1x1x8xf32>
    %14 = vector.shape_cast %13 : vector<1x1x8xf32> to vector<1x8xf32>
    %15 = vector.shape_cast %14 : vector<1x8xf32> to vector<1x8xf32>
    %16 = vector.broadcast %15 : vector<1x8xf32> to vector<8x8xf32>
    %17 = vector.extract_strided_slice %8 {offsets = [0, 0], sizes = [8, 8], strides = [1, 1]} : vector<8x32xbf16> to vector<8x8xbf16>
    %18 = vector.extract_strided_slice %10 {offsets = [0, 0], sizes = [8, 8], strides = [1, 1]} : vector<8x32xbf16> to vector<8x8xbf16>
    %19 = vector.extract_strided_slice %12 {offsets = [0, 0], sizes = [8, 8], strides = [1, 1]} : vector<8x32xbf16> to vector<8x8xbf16>
    %cst_9 = arith.constant dense<0.000000e+00> : vector<8x8xf32>
    %20 = tpu.matmul %17, %18, %cst_9 {dimension_numbers = #tpu.dot_dimension_numbers<[1], [1], [0], [0], [0, 0, 1, 0], [], []>} : vector<8x8xbf16>, vector<8x8xbf16>, vector<8x8xf32> -> vector<8x8xf32>
    %21 = arith.addf %20, %16 : vector<8x8xf32>
    %cst_10 = arith.constant dense<0xFF800000> : vector<8xf32>
    %22 = vector.multi_reduction <maximumf>, %21, %cst_10 [1] : vector<8x8xf32> to vector<8xf32>
    %23 = vector.shape_cast %22 : vector<8xf32> to vector<8x1xf32>
    %24 = vector.broadcast %23 : vector<8x1xf32> to vector<8x8xf32>
    %25 = arith.subf %21, %24 : vector<8x8xf32>
    %26 = math.exp %25 : vector<8x8xf32>
    %cst_11 = arith.constant dense<0.000000e+00> : vector<8xf32>
    %27 = vector.multi_reduction <add>, %26, %cst_11 [1] : vector<8x8xf32> to vector<8xf32>
    %28 = vector.shape_cast %27 : vector<8xf32> to vector<8x1xf32>
    %29 = tpu.reciprocal %28 {approx = true} : vector<8x1xf32> -> vector<8x1xf32>
    %30 = vector.broadcast %29 : vector<8x1xf32> to vector<8x8xf32>
    %31 = arith.mulf %26, %30 : vector<8x8xf32>
    %32 = arith.truncf %31 : vector<8x8xf32> to vector<8x8xbf16>
    %cst_12 = arith.constant dense<0.000000e+00> : vector<8x8xf32>
    %33 = tpu.matmul %32, %19, %cst_12 {dimension_numbers = #tpu.dot_dimension_numbers<[1], [0], [0], [1], [0, 0, 1, 1], [], []>} : vector<8x8xbf16>, vector<8x8xbf16>, vector<8x8xf32> -> vector<8x8xf32>
    %34 = vector.extract_strided_slice %8 {offsets = [0, 8], sizes = [8, 8], strides = [1, 1]} : vector<8x32xbf16> to vector<8x8xbf16>
    %35 = vector.extract_strided_slice %10 {offsets = [0, 8], sizes = [8, 8], strides = [1, 1]} : vector<8x32xbf16> to vector<8x8xbf16>
    %36 = vector.extract_strided_slice %12 {offsets = [0, 8], sizes = [8, 8], strides = [1, 1]} : vector<8x32xbf16> to vector<8x8xbf16>
    %cst_13 = arith.constant dense<0.000000e+00> : vector<8x8xf32>
    %37 = tpu.matmul %34, %35, %cst_13 {dimension_numbers = #tpu.dot_dimension_numbers<[1], [1], [0], [0], [0, 0, 1, 0], [], []>} : vector<8x8xbf16>, vector<8x8xbf16>, vector<8x8xf32> -> vector<8x8xf32>
    %38 = arith.addf %37, %16 : vector<8x8xf32>
    %cst_14 = arith.constant dense<0xFF800000> : vector<8xf32>
    %39 = vector.multi_reduction <maximumf>, %38, %cst_14 [1] : vector<8x8xf32> to vector<8xf32>
    %40 = vector.shape_cast %39 : vector<8xf32> to vector<8x1xf32>
    %41 = vector.broadcast %40 : vector<8x1xf32> to vector<8x8xf32>
    %42 = arith.subf %38, %41 : vector<8x8xf32>
    %43 = math.exp %42 : vector<8x8xf32>
    %cst_15 = arith.constant dense<0.000000e+00> : vector<8xf32>
    %44 = vector.multi_reduction <add>, %43, %cst_15 [1] : vector<8x8xf32> to vector<8xf32>
    %45 = vector.shape_cast %44 : vector<8xf32> to vector<8x1xf32>
    %46 = tpu.reciprocal %45 {approx = true} : vector<8x1xf32> -> vector<8x1xf32>
    %47 = vector.broadcast %46 : vector<8x1xf32> to vector<8x8xf32>
    %48 = arith.mulf %43, %47 : vector<8x8xf32>
    %49 = arith.truncf %48 : vector<8x8xf32> to vector<8x8xbf16>
    %cst_16 = arith.constant dense<0.000000e+00> : vector<8x8xf32>
    %50 = tpu.matmul %49, %36, %cst_16 {dimension_numbers = #tpu.dot_dimension_numbers<[1], [0], [0], [1], [0, 0, 1, 1], [], []>} : vector<8x8xbf16>, vector<8x8xbf16>, vector<8x8xf32> -> vector<8x8xf32>
    %51 = vector.extract_strided_slice %8 {offsets = [0, 16], sizes = [8, 8], strides = [1, 1]} : vector<8x32xbf16> to vector<8x8xbf16>
    %52 = vector.extract_strided_slice %10 {offsets = [0, 16], sizes = [8, 8], strides = [1, 1]} : vector<8x32xbf16> to vector<8x8xbf16>
    %53 = vector.extract_strided_slice %12 {offsets = [0, 16], sizes = [8, 8], strides = [1, 1]} : vector<8x32xbf16> to vector<8x8xbf16>
    %cst_17 = arith.constant dense<0.000000e+00> : vector<8x8xf32>
    %54 = tpu.matmul %51, %52, %cst_17 {dimension_numbers = #tpu.dot_dimension_numbers<[1], [1], [0], [0], [0, 0, 1, 0], [], []>} : vector<8x8xbf16>, vector<8x8xbf16>, vector<8x8xf32> -> vector<8x8xf32>
    %55 = arith.addf %54, %16 : vector<8x8xf32>
    %cst_18 = arith.constant dense<0xFF800000> : vector<8xf32>
    %56 = vector.multi_reduction <maximumf>, %55, %cst_18 [1] : vector<8x8xf32> to vector<8xf32>
    %57 = vector.shape_cast %56 : vector<8xf32> to vector<8x1xf32>
    %58 = vector.broadcast %57 : vector<8x1xf32> to vector<8x8xf32>
    %59 = arith.subf %55, %58 : vector<8x8xf32>
    %60 = math.exp %59 : vector<8x8xf32>
    %cst_19 = arith.constant dense<0.000000e+00> : vector<8xf32>
    %61 = vector.multi_reduction <add>, %60, %cst_19 [1] : vector<8x8xf32> to vector<8xf32>
    %62 = vector.shape_cast %61 : vector<8xf32> to vector<8x1xf32>
    %63 = tpu.reciprocal %62 {approx = true} : vector<8x1xf32> -> vector<8x1xf32>
    %64 = vector.broadcast %63 : vector<8x1xf32> to vector<8x8xf32>
    %65 = arith.mulf %60, %64 : vector<8x8xf32>
    %66 = arith.truncf %65 : vector<8x8xf32> to vector<8x8xbf16>
    %cst_20 = arith.constant dense<0.000000e+00> : vector<8x8xf32>
    %67 = tpu.matmul %66, %53, %cst_20 {dimension_numbers = #tpu.dot_dimension_numbers<[1], [0], [0], [1], [0, 0, 1, 1], [], []>} : vector<8x8xbf16>, vector<8x8xbf16>, vector<8x8xf32> -> vector<8x8xf32>
    %68 = vector.extract_strided_slice %8 {offsets = [0, 24], sizes = [8, 8], strides = [1, 1]} : vector<8x32xbf16> to vector<8x8xbf16>
    %69 = vector.extract_strided_slice %10 {offsets = [0, 24], sizes = [8, 8], strides = [1, 1]} : vector<8x32xbf16> to vector<8x8xbf16>
    %70 = vector.extract_strided_slice %12 {offsets = [0, 24], sizes = [8, 8], strides = [1, 1]} : vector<8x32xbf16> to vector<8x8xbf16>
    %cst_21 = arith.constant dense<0.000000e+00> : vector<8x8xf32>
    %71 = tpu.matmul %68, %69, %cst_21 {dimension_numbers = #tpu.dot_dimension_numbers<[1], [1], [0], [0], [0, 0, 1, 0], [], []>} : vector<8x8xbf16>, vector<8x8xbf16>, vector<8x8xf32> -> vector<8x8xf32>
    %72 = arith.addf %71, %16 : vector<8x8xf32>
    %cst_22 = arith.constant dense<0xFF800000> : vector<8xf32>
    %73 = vector.multi_reduction <maximumf>, %72, %cst_22 [1] : vector<8x8xf32> to vector<8xf32>
    %74 = vector.shape_cast %73 : vector<8xf32> to vector<8x1xf32>
    %75 = vector.broadcast %74 : vector<8x1xf32> to vector<8x8xf32>
    %76 = arith.subf %72, %75 : vector<8x8xf32>
    %77 = math.exp %76 : vector<8x8xf32>
    %cst_23 = arith.constant dense<0.000000e+00> : vector<8xf32>
    %78 = vector.multi_reduction <add>, %77, %cst_23 [1] : vector<8x8xf32> to vector<8xf32>
    %79 = vector.shape_cast %78 : vector<8xf32> to vector<8x1xf32>
    %80 = tpu.reciprocal %79 {approx = true} : vector<8x1xf32> -> vector<8x1xf32>
    %81 = vector.broadcast %80 : vector<8x1xf32> to vector<8x8xf32>
    %82 = arith.mulf %77, %81 : vector<8x8xf32>
    %83 = arith.truncf %82 : vector<8x8xf32> to vector<8x8xbf16>
    %cst_24 = arith.constant dense<0.000000e+00> : vector<8x8xf32>
    %84 = tpu.matmul %83, %70, %cst_24 {dimension_numbers = #tpu.dot_dimension_numbers<[1], [0], [0], [1], [0, 0, 1, 1], [], []>} : vector<8x8xbf16>, vector<8x8xbf16>, vector<8x8xf32> -> vector<8x8xf32>
    %85 = tpu.concatenate %33, %50, %67, %84 in 1 : vector<8x8xf32>, vector<8x8xf32>, vector<8x8xf32>, vector<8x8xf32> -> vector<8x32xf32>
    %c0_25 = arith.constant 0 : index
    %c0_26 = arith.constant 0 : index
    %86 = vector.load %arg17[%c0_25, %c0_26] : memref<8x32xf32, #tpu.memory_space<vmem>>, vector<8x32xf32>
    tpu.vector_store %arg17[%c0_25, %c0_26], %85 {strides = array<i32>} : memref<8x32xf32, #tpu.memory_space<vmem>>, vector<8x32xf32>,
    %c0_27 = arith.constant 0 : index
    %c0_28 = arith.constant 0 : index
    %87 = vector.load %arg17[%c0_27, %c0_28] : memref<8x32xf32, #tpu.memory_space<vmem>>, vector<8x32xf32>
    %88 = arith.truncf %87 : vector<8x32xf32> to vector<8x32xbf16>
    %c0_29 = arith.constant 0 : index
    %c0_30 = arith.constant 0 : index
    %89 = vector.load %arg6[%c0_29, %c0_30] : memref<32x32xbf16, #tpu.memory_space<vmem>>, vector<32x32xbf16>
    %cst_31 = arith.constant dense<0.000000e+00> : vector<8x32xf32>
    %90 = tpu.matmul %88, %89, %cst_31 {dimension_numbers = #tpu.dot_dimension_numbers<[1], [0], [0], [1], [0, 0, 1, 1], [], []>} : vector<8x32xbf16>, vector<32x32xbf16>, vector<8x32xf32> -> vector<8x32xf32>
    %c0_32 = arith.constant 0 : index
    %c0_33 = arith.constant 0 : index
    %91 = vector.load %arg7[%c0_32, %c0_33] : memref<1x32xf32, #tpu.memory_space<vmem>>, vector<1x32xf32>
    %92 = vector.broadcast %91 : vector<1x32xf32> to vector<8x32xf32>
    %93 = arith.addf %90, %92 : vector<8x32xf32>
    %94 = arith.extf %1 : vector<8x32xbf16> to vector<8x32xf32>
    %95 = arith.addf %93, %94 : vector<8x32xf32>
    %c0_34 = arith.constant 0 : index
    %c0_35 = arith.constant 0 : index
    %96 = vector.load %arg8[%c0_34, %c0_35] : memref<1x32xf32, #tpu.memory_space<vmem>>, vector<1x32xf32>
    %c0_36 = arith.constant 0 : index
    %c0_37 = arith.constant 0 : index
    %97 = vector.load %arg9[%c0_36, %c0_37] : memref<1x32xf32, #tpu.memory_space<vmem>>, vector<1x32xf32>
    %cst_38 = arith.constant dense<0.000000e+00> : vector<8xf32>
    %98 = vector.multi_reduction <add>, %95, %cst_38 [1] : vector<8x32xf32> to vector<8xf32>
    %99 = vector.shape_cast %98 : vector<8xf32> to vector<8x1xf32>
    %cst_39 = arith.constant 3.200000e+01 : f32
    %100 = vector.broadcast %cst_39 : f32 to vector<8x1xf32>
    %101 = arith.divf %99, %100 : vector<8x1xf32>
    %102 = vector.broadcast %101 : vector<8x1xf32> to vector<8x32xf32>
    %103 = arith.subf %95, %102 : vector<8x32xf32>
    %104 = arith.mulf %103, %103 : vector<8x32xf32>
    %cst_40 = arith.constant dense<0.000000e+00> : vector<8xf32>
    %105 = vector.multi_reduction <add>, %104, %cst_40 [1] : vector<8x32xf32> to vector<8xf32>
    %106 = vector.shape_cast %105 : vector<8xf32> to vector<8x1xf32>
    %cst_41 = arith.constant 3.200000e+01 : f32
    %107 = vector.broadcast %cst_41 : f32 to vector<8x1xf32>
    %108 = arith.divf %106, %107 : vector<8x1xf32>
    %cst_42 = arith.constant 9.99999996E-13 : f32
    %109 = vector.broadcast %cst_42 : f32 to vector<8x1xf32>
    %110 = arith.addf %108, %109 : vector<8x1xf32>
    %111 = math.rsqrt %110 : vector<8x1xf32>
    %112 = vector.broadcast %111 : vector<8x1xf32> to vector<8x32xf32>
    %113 = arith.mulf %103, %112 : vector<8x32xf32>
    %114 = vector.broadcast %96 : vector<1x32xf32> to vector<8x32xf32>
    %115 = arith.mulf %113, %114 : vector<8x32xf32>
    %116 = vector.broadcast %97 : vector<1x32xf32> to vector<8x32xf32>
    %117 = arith.addf %115, %116 : vector<8x32xf32>
    %118 = arith.truncf %117 : vector<8x32xf32> to vector<8x32xbf16>
    %c0_43 = arith.constant 0 : index
    %c0_44 = arith.constant 0 : index
    %119 = vector.load %arg10[%c0_43, %c0_44] : memref<32x64xbf16, #tpu.memory_space<vmem>>, vector<32x64xbf16>
    %cst_45 = arith.constant dense<0.000000e+00> : vector<8x64xf32>
    %120 = tpu.matmul %118, %119, %cst_45 {dimension_numbers = #tpu.dot_dimension_numbers<[1], [0], [0], [1], [0, 0, 1, 1], [], []>} : vector<8x32xbf16>, vector<32x64xbf16>, vector<8x64xf32> -> vector<8x64xf32>
    %c0_46 = arith.constant 0 : index
    %c0_47 = arith.constant 0 : index
    %121 = vector.load %arg11[%c0_46, %c0_47] : memref<1x64xf32, #tpu.memory_space<vmem>>, vector<1x64xf32>
    %122 = vector.broadcast %121 : vector<1x64xf32> to vector<8x64xf32>
    %123 = arith.addf %120, %122 : vector<8x64xf32>
    %cst_48 = arith.constant 5.000000e-01 : f32
    %124 = vector.broadcast %cst_48 : f32 to vector<8x64xf32>
    %125 = arith.mulf %124, %123 : vector<8x64xf32>
    %cst_49 = arith.constant 0.707106769 : f32
    %126 = vector.broadcast %cst_49 : f32 to vector<8x64xf32>
    %127 = arith.mulf %123, %126 : vector<8x64xf32>
    %128 = math.erf %127 : vector<8x64xf32>
    %cst_50 = arith.constant 1.000000e+00 : f32
    %129 = vector.broadcast %cst_50 : f32 to vector<8x64xf32>
    %130 = arith.addf %129, %128 : vector<8x64xf32>
    %131 = arith.mulf %125, %130 : vector<8x64xf32>
    %132 = arith.truncf %131 : vector<8x64xf32> to vector<8x64xbf16>
    %c0_51 = arith.constant 0 : index
    %c0_52 = arith.constant 0 : index
    %133 = vector.load %arg12[%c0_51, %c0_52] : memref<64x32xbf16, #tpu.memory_space<vmem>>, vector<64x32xbf16>
    %cst_53 = arith.constant dense<0.000000e+00> : vector<8x32xf32>
    %134 = tpu.matmul %132, %133, %cst_53 {dimension_numbers = #tpu.dot_dimension_numbers<[1], [0], [0], [1], [0, 0, 1, 1], [], []>} : vector<8x64xbf16>, vector<64x32xbf16>, vector<8x32xf32> -> vector<8x32xf32>
    %c0_54 = arith.constant 0 : index
    %c0_55 = arith.constant 0 : index
    %135 = vector.load %arg13[%c0_54, %c0_55] : memref<1x32xf32, #tpu.memory_space<vmem>>, vector<1x32xf32>
    %136 = vector.broadcast %135 : vector<1x32xf32> to vector<8x32xf32>
    %137 = arith.addf %134, %136 : vector<8x32xf32>
    %138 = arith.addf %137, %117 : vector<8x32xf32>
    %c0_56 = arith.constant 0 : index
    %c0_57 = arith.constant 0 : index
    %139 = vector.load %arg14[%c0_56, %c0_57] : memref<1x32xf32, #tpu.memory_space<vmem>>, vector<1x32xf32>
    %c0_58 = arith.constant 0 : index
    %c0_59 = arith.constant 0 : index
    %140 = vector.load %arg15[%c0_58, %c0_59] : memref<1x32xf32, #tpu.memory_space<vmem>>, vector<1x32xf32>
    %cst_60 = arith.constant dense<0.000000e+00> : vector<8xf32>
    %141 = vector.multi_reduction <add>, %138, %cst_60 [1] : vector<8x32xf32> to vector<8xf32>
    %142 = vector.shape_cast %141 : vector<8xf32> to vector<8x1xf32>
    %cst_61 = arith.constant 3.200000e+01 : f32
    %143 = vector.broadcast %cst_61 : f32 to vector<8x1xf32>
    %144 = arith.divf %142, %143 : vector<8x1xf32>
    %145 = vector.broadcast %144 : vector<8x1xf32> to vector<8x32xf32>
    %146 = arith.subf %138, %145 : vector<8x32xf32>
    %147 = arith.mulf %146, %146 : vector<8x32xf32>
    %cst_62 = arith.constant dense<0.000000e+00> : vector<8xf32>
    %148 = vector.multi_reduction <add>, %147, %cst_62 [1] : vector<8x32xf32> to vector<8xf32>
    %149 = vector.shape_cast %148 : vector<8xf32> to vector<8x1xf32>
    %cst_63 = arith.constant 3.200000e+01 : f32
    %150 = vector.broadcast %cst_63 : f32 to vector<8x1xf32>
    %151 = arith.divf %149, %150 : vector<8x1xf32>
    %cst_64 = arith.constant 9.99999996E-13 : f32
    %152 = vector.broadcast %cst_64 : f32 to vector<8x1xf32>
    %153 = arith.addf %151, %152 : vector<8x1xf32>
    %154 = math.rsqrt %153 : vector<8x1xf32>
    %155 = vector.broadcast %154 : vector<8x1xf32> to vector<8x32xf32>
    %156 = arith.mulf %146, %155 : vector<8x32xf32>
    %157 = vector.broadcast %139 : vector<1x32xf32> to vector<8x32xf32>
    %158 = arith.mulf %156, %157 : vector<8x32xf32>
    %159 = vector.broadcast %140 : vector<1x32xf32> to vector<8x32xf32>
    %160 = arith.addf %158, %159 : vector<8x32xf32>
    %161 = arith.truncf %160 : vector<8x32xf32> to vector<8x32xbf16>
    %c0_65 = arith.constant 0 : index
    %c0_66 = arith.constant 0 : index
    %c0_67 = arith.constant 0 : index
    %162 = vector.load %arg16[%c0_65, %c0_66, %c0_67] : memref<1x8x32xbf16, #tpu.memory_space<vmem>>, vector<1x8x32xbf16>
    %163 = vector.shape_cast %162 : vector<1x8x32xbf16> to vector<8x32xbf16>
    %164 = vector.shape_cast %161 : vector<8x32xbf16> to vector<1x8x32xbf16>
    tpu.vector_store %arg16[%c0_65, %c0_66, %c0_67], %164 {strides = array<i32>} : memref<1x8x32xbf16, #tpu.memory_space<vmem>>, vector<1x8x32xbf16>,
    return
  }
  func.func @transform_0(%arg0: i32, %arg1: i32) -> (i32, i32, i32) {
    %c0_i32 = arith.constant 0 : i32
    %c0_i32_0 = arith.constant 0 : i32
    %c0_i32_1 = arith.constant 0 : i32
    return %arg0, %c0_i32, %c0_i32_0 : i32, i32, i32
  }
  func.func @transform_1(%arg0: i32, %arg1: i32) -> (i32, i32, i32) {
    %c0_i32 = arith.constant 0 : i32
    %c0_i32_0 = arith.constant 0 : i32
    %c0_i32_1 = arith.constant 0 : i32
    return %arg0, %c0_i32, %c0_i32_0 : i32, i32, i32
  }
  func.func @transform_2(%arg0: i32, %arg1: i32) -> (i32, i32) {
    %c0_i32 = arith.constant 0 : i32
    %c0_i32_0 = arith.constant 0 : i32
    %c0_i32_1 = arith.constant 0 : i32
    return %c0_i32, %c0_i32_0 : i32, i32
  }
  func.func @transform_3(%arg0: i32, %arg1: i32) -> (i32, i32) {
    %c0_i32 = arith.constant 0 : i32
    %c0_i32_0 = arith.constant 0 : i32
    %c0_i32_1 = arith.constant 0 : i32
    return %c0_i32, %c0_i32_0 : i32, i32
  }
  func.func @transform_4(%arg0: i32, %arg1: i32) -> (i32, i32) {
    %c0_i32 = arith.constant 0 : i32
    %c0_i32_0 = arith.constant 0 : i32
    %c0_i32_1 = arith.constant 0 : i32
    return %c0_i32, %c0_i32_0 : i32, i32
  }
  func.func @transform_5(%arg0: i32, %arg1: i32) -> (i32, i32) {
    %c0_i32 = arith.constant 0 : i32
    %c0_i32_0 = arith.constant 0 : i32
    %c0_i32_1 = arith.constant 0 : i32
    return %c0_i32, %c0_i32_0 : i32, i32
  }
  func.func @transform_6(%arg0: i32, %arg1: i32) -> (i32, i32) {
    %c0_i32 = arith.constant 0 : i32
    %c0_i32_0 = arith.constant 0 : i32
    %c0_i32_1 = arith.constant 0 : i32
    return %c0_i32, %c0_i32_0 : i32, i32
  }
  func.func @transform_7(%arg0: i32, %arg1: i32) -> (i32, i32) {
    %c0_i32 = arith.constant 0 : i32
    %c0_i32_0 = arith.constant 0 : i32
    %c0_i32_1 = arith.constant 0 : i32
    return %c0_i32, %c0_i32_0 : i32, i32
  }
  func.func @transform_8(%arg0: i32, %arg1: i32) -> (i32, i32) {
    %c0_i32 = arith.constant 0 : i32
    %c0_i32_0 = arith.constant 0 : i32
    %c0_i32_1 = arith.constant 0 : i32
    return %c0_i32, %c0_i32_0 : i32, i32
  }
  func.func @transform_9(%arg0: i32, %arg1: i32) -> (i32, i32) {
    %c0_i32 = arith.constant 0 : i32
    %c0_i32_0 = arith.constant 0 : i32
    %c0_i32_1 = arith.constant 0 : i32
    return %c0_i32, %c0_i32_0 : i32, i32
  }
  func.func @transform_10(%arg0: i32, %arg1: i32) -> (i32, i32) {
    %c0_i32 = arith.constant 0 : i32
    %c0_i32_0 = arith.constant 0 : i32
    %c0_i32_1 = arith.constant 0 : i32
    return %c0_i32, %c0_i32_0 : i32, i32
  }
  func.func @transform_11(%arg0: i32, %arg1: i32) -> (i32, i32) {
    %c0_i32 = arith.constant 0 : i32
    %c0_i32_0 = arith.constant 0 : i32
    %c0_i32_1 = arith.constant 0 : i32
    return %c0_i32, %c0_i32_0 : i32, i32
  }
  func.func @transform_12(%arg0: i32, %arg1: i32) -> (i32, i32) {
    %c0_i32 = arith.constant 0 : i32
    %c0_i32_0 = arith.constant 0 : i32
    %c0_i32_1 = arith.constant 0 : i32
    return %c0_i32, %c0_i32_0 : i32, i32
  }
  func.func @transform_13(%arg0: i32, %arg1: i32) -> (i32, i32) {
    %c0_i32 = arith.constant 0 : i32
    %c0_i32_0 = arith.constant 0 : i32
    %c0_i32_1 = arith.constant 0 : i32
    return %c0_i32, %c0_i32_0 : i32, i32
  }
  func.func @transform_14(%arg0: i32, %arg1: i32) -> (i32, i32, i32) {
    %c0_i32 = arith.constant 0 : i32
    %c0_i32_0 = arith.constant 0 : i32
    return %arg0, %arg1, %c0_i32 : i32, i32, i32
  }
}

</mosaic_0001>

<bundles_post_ra>
// kernel: tpu_custom_call.1
= control target key start
LH: loop header
LB: loop body
LE: loop exit
PB: predicated region body
PF: predicated region fallthrough
CT: control target
= control target key end

     0   :  { %6 = vsyncpa [#allocation3], 0  ;;  %s286_s0 = inlined_call_operand.hbm [shape: f32[8,128], index: 0, kind: input, shape index: {}]   ;;  %s287_s1 = inlined_call_operand.hbm [shape: f32[8,128], index: 1, kind: output, shape index: {}]  }
   0x1   :  { %7 = vsyncpa [#allocation4], 0  ;;  %s269_s6 = smov 0  }
   0x2 LB: > { %s148_s7 = sadd.s32 4294967295, %s255_s6   ;;  %p149_p0 = scmp.ge.s32.totalorder %s255_s6, 1  ;;  %s255_s6 = sphi %s269_s6, %s13_s6  }
   0x3   : > { %p60_p1 = scmp.lt.s32.totalorder %s255_s6, 3  ;;  %s72_s10 = sshll.u32 %s286_s0, 4  ;;  %s73_s10 = int_to_ptr.hbm [resolvable:$true] %s72_s10 }
   0x4   : > { %p169_p3 = scmp.eq.s32.totalorder %s148_s7, 0  ;;  %s257_s11 = smov [#allocation2]  }
   0x5   : > { %p61_p2 = pnand %p149_p0, %p60_p1  ;;  %s74_s12 = sshll.u32 %s257_s11, 4  ;;  %s75_s12 = int_to_ptr.vmem [resolvable:$true] %s74_s12 }
   0x7   : > { %p165_p4 = pneg %p61_p2  ;;  %87 = sbr.rel (%p61_p2) target bundleno = 19 (0x13), region = 24 }
   0x9   : > { %p166_p5 = pnand %p169_p3, %p165_p4 }
   0xb   : > { %168 = dma.hbm_to_vmem [thread:$0]  (!%p166_p5), %s73_s10, 128, %s75_s12, [#allocation3]  }
   0xc   : > { %246 = dma.done.wait (%p169_p3), [#allocation3], 128  }
   0xd   : > { %248 = vsyncadd (%p169_p3), [#allocation3], 4294967168  ;;  %s258_s13 = smov [#allocation5]   ;;  %s108_s17 = sshll.u32 %s287_s1, 4  ;;  %v98_v0 = vld [vmem:[#allocation2] sm:$0xff]  ;;  %s109_s17 = int_to_ptr.hbm [resolvable:$true] %s108_s17 }
   0xe   : > { %s106_s14 = sshll.u32 %s258_s13, 4  ;;  %p171_p6 = scmp.eq.s32.totalorder %s148_s7, 1  ;;  %99 = vst [vmem:[#allocation5] sm:$0xff] %v98_v0  ;;  %s107_s14 = int_to_ptr.vmem [resolvable:$true] %s106_s14 }
  0x10   : > { %162 = dma.vmem_to_hbm [thread:$0]  (%p171_p6), %s107_s14, 128, %s109_s17, [#allocation4]  }
  0x11   : > { %250 = dma.done.wait (%p171_p6), [#allocation4], 128  }
  0x12   : > { %252 = vsyncadd (%p171_p6), [#allocation4], 4294967168 }
  0x13 PF: > { %s13_s6 = sadd.s32 1, %s255_s6  }
  0x14   : > { %p10_p7 = scmp.ge.s32.totalorder %s13_s6, 4  }
  0x16   :  { %12 = sbr.rel (!%p10_p7) target bundleno = 2 (0x2), region = 53 }
  0x1b   :  { %122 = vsyncpa [#allocation3], 1 }
  0x1c   :  { %124 = vsyncpa [#allocation3 + $0x1], 1 }
  0x1d   :  { %125 = vsyncpa [#allocation4], 1 }
  0x1e   :  { %127 = vsyncpa [#allocation4 + $0x1], 1 }

// kernel: tpu_custom_call.1
= control target key start
LH: loop header
LB: loop body
LE: loop exit
PB: predicated region body
PF: predicated region fallthrough
CT: control target
= control target key end

     0   :  { %s1868_s0 = inlined_call_operand.hbm [shape: bf16[2,8,32], index: 0, kind: input, shape index: {}]   ;;  %s1869_s1 = inlined_call_operand.hbm [shape: f32[2,1,8], index: 1, kind: input, shape index: {}]   ;;  %s1870_s2 = inlined_call_operand.vmem [shape: bf16[32,96], index: 2, kind: input, shape index: {}]   ;;  %s1871_s3 = inlined_call_operand.vmem [shape: f32[1,96], index: 3, kind: input, shape index: {}]   ;;  %s1872_s4 = inlined_call_operand.vmem [shape: bf16[32,32], index: 4, kind: input, shape index: {}]   ;;  %s1873_s5 = inlined_call_operand.vmem [shape: f32[1,32], index: 5, kind: input, shape index: {}]   ;;  %s1874_s6 = inlined_call_operand.vmem [shape: f32[1,32], index: 6, kind: input, shape index: {}]   ;;  %s1875_s7 = inlined_call_operand.vmem [shape: f32[1,32], index: 7, kind: input, shape index: {}]   ;;  %s1876_s8 = inlined_call_operand.vmem [shape: bf16[32,64], index: 8, kind: input, shape index: {}]   ;;  %s1877_s9 = inlined_call_operand.vmem [shape: f32[1,64], index: 9, kind: input, shape index: {}]   ;;  %s1878_s10 = inlined_call_operand.vmem [shape: bf16[64,32], index: 10, kind: input, shape index: {}]   ;;  %s1879_s11 = inlined_call_operand.vmem [shape: f32[1,32], index: 11, kind: input, shape index: {}]   ;;  %s1880_s12 = inlined_call_operand.vmem [shape: f32[1,32], index: 12, kind: input, shape index: {}]   ;;  %s1881_s13 = inlined_call_operand.vmem [shape: f32[1,32], index: 13, kind: input, shape index: {}]   ;;  %s1882_s14 = inlined_call_operand.hbm [shape: bf16[2,8,32], index: 14, kind: output, shape index: {}]  }
   0x1   :  { %1890 = sst [smem:[#allocation19_spill]] %s1868_s0 }
   0x2   :  { %1891 = sst [smem:[#allocation20_spill]] %s1879_s11 }
   0x3   :  { %1892 = sst [smem:[#allocation21_spill]] %s1880_s12 }
   0x4   :  { %1893 = sst [smem:[#allocation22_spill]] %s1881_s13 }
   0x5   :  { %1894 = sst [smem:[#allocation23_spill]] %s1882_s14 }
   0x6   :  { %19 = vsyncpa [#allocation4], 0 }
   0x7   :  { %21 = vsyncpa [#allocation4 + $0x1], 0 }
   0x8   :  { %22 = vsyncpa [#allocation7], 0 }
   0x9   :  { %24 = vsyncpa [#allocation7 + $0x1], 0 }
   0xa   :  { %25 = vsyncpa [#allocation5], 0 }
   0xb   :  { %27 = vsyncpa [#allocation5 + $0x1], 0  ;;  %s1617_s29 = smov 0   ;;  %s1619_s30 = smov 0  }
   0xc   :  { %s1621_s15 = smov 0   ;;  %s1623_s16 = smov 0  }
   0xd   :  { %s1625_s17 = smov 0   ;;  %s1627_s18 = smov 0  }
   0xe LB: > { %1895 = sst [smem:[#allocation12_spill]] %s1505_s29  ;;  %s1188_s19 = sadd.s32 4294967295, %s1525_s18   ;;  %s1525_s18 = sphi %s1627_s18, %s33_s18   ;;  %s1521_s17 = sphi %s1625_s17, %s1922_s17   ;;  %s1517_s16 = sphi %s1623_s16, %s1921_s16   ;;  %s1513_s15 = sphi %s1621_s15, %s1917_s15   ;;  %s1509_s30 = sphi %s1619_s30, %s1920_s30   ;;  %s1505_s29 = sphi %s1617_s29, %s1919_s29  }
   0xf   : > { %1896 = sst [smem:[#allocation13_spill]] %s1513_s15  ;;  %s1189_s20 = sadd.s32 4294967294, %s1525_s18  }
  0x10   : > { %1897 = sst [smem:[#allocation14_spill]] %s1517_s16  ;;  %s45_s21 = sadd.s32 1, %s1521_s17 }
  0x11   : > { %s52_s22 = sadd.s32 1, %s1513_s15  ;;  %p47_p0 = scmp.ge.s32.totalorder %s45_s21, 2 }
  0x12   : > { %p59_p1 = scmp.ne.s32.totalorder %s1513_s15, %s1509_s30  ;;  %p60_p2 = scmp.eq.s32.totalorder %s1525_s18, 0 }
  0x13   : > { %p65_p3 = scmp.ne.s32.totalorder %s1509_s30, %s1505_s29  ;;  %s1924_s21 = smov (%p47_p0, %s45_s21), 0 }
  0x14   : > { %1898 = sst [smem:[#allocation15_spill]] %s1924_s21  ;;  %p1658_p4 = por %p60_p2, %p59_p1 }
  0x15   : > { %p66_p5 = scmp.eq.s32.totalorder %s1188_s19, 0  ;;  %s49_s24 = ssub.s32 %s1521_s17, %s1924_s21 }
  0x16   : > { %p369_p6 = scmp.eq.s32.totalorder %s1188_s19, 1  ;;  %p50_p7 = scmp.eq.s32.totalorder %s49_s24, 0 }
  0x17   : > { %p1664_p8 = por %p66_p5, %p65_p3  ;;  %p375_p10 = scmp.eq.s32.totalorder %s1189_s20, 1 }
  0x18   : > { %p1668_p9 = por %p369_p6, %p59_p1  ;;  %p1191_p12 = scmp.ge.s32.totalorder %s1525_s18, 2 }
  0x19   : > { %s1673_s27 = scalar_select %p50_p7, %s1513_s15, %s52_s22  }
  0x1a   : > { %s1901_s26 = scalar_select %p1668_p9, 1, 0 }
  0x1b   : > { %1903 = sst [smem:[#allocation17_spill]] %s1673_s27  ;;  %p1675_p11 = por %p375_p10, %p65_p3 }
  0x1c   : > { %1902 = sst [smem:[#allocation16_spill]] %s1901_s26  ;;  %p1281_p13 = scmp.lt.s32.totalorder %s1525_s18, 2 }
  0x1d   : > { %s1904_s28 = scalar_select %p1675_p11, 1, 0 }
  0x1e   : > { %s431_s19 = sand.u32 1, %s1513_s15   ;;  %s1193_s21 = sshll.u32 %s1521_s17, 2 }
  0x1f   : > { %1905 = sst [smem:[#allocation18_spill]] %s1904_s28  ;;  %s1192_s24 = sshll.u32 %s431_s19, 2 }
  0x20   : > { %s1906_s0 = sld [smem:[#allocation19_spill]]  ;;  %s435_s26 = scalar_lea.vmem [#allocation3], %s1192_s24 }
  0x21   : > { %s443_s12 = sshll.u32 %s435_s26, 4  ;;  %p1271_p0 = pnand %p1281_p13, %p1658_p4  ;;  %s444_s12 = int_to_ptr.vmem [resolvable:$true] %s443_s12 }
  0x22   : > { %p1194_p1 = scmp.ge.s32.totalorder %s1525_s18, 1  ;;  %p465_p2 = scmp.lt.s32.totalorder %s1525_s18, 3 }
  0x23   : > { %s432_s22 = scalar_lea.sflag [#allocation4], %s431_s19  ;;  %s456_s28 = scalar_lea.hbm %s1869_s1, %s1521_s17 }
  0x24   : > { %p466_p3 = pnand %p1194_p1, %p465_p2  ;;  %s453_s16 = scalar_lea.vmem [#allocation6], %s431_s19 }
  0x25   : > { %s460_s11 = sshll.u32 %s453_s16, 4  ;;  %s458_s14 = sshll.u32 %s456_s28, 4  ;;  %s461_s11 = int_to_ptr.vmem [resolvable:$true] %s460_s11  ;;  %s459_s14 = int_to_ptr.hbm [resolvable:$true] %s458_s14 }
  0x26   : > { %s439_s13 = scalar_lea.hbm %s1906_s0, %s1193_s21  ;;  %s451_s29 = scalar_lea.sflag [#allocation7], %s431_s19 }
  0x27   : > { %s441_s20 = sshll.u32 %s439_s13, 4  ;;  %469 = sbr.rel (%p466_p3) target bundleno = 1992 (0x7c8), region = 76  ;;  %s442_s20 = int_to_ptr.hbm [resolvable:$true] %s441_s20 }
  0x28   : > { %1273 = dma.hbm_to_vmem [thread:$0]  (!%p1271_p0), %s442_s20, 64, %s444_s12, %s432_s22  }
  0x29   : > { %1276 = dma.hbm_to_vmem [thread:$0]  (!%p1271_p0), %s459_s14, 16, %s461_s11, %s451_s29  }
  0x2a   : > { %s1695_s13 = sand.u32 (!%p466_p3), 1, %s1509_s30  }
  0x2b   : > { %s1195_s12 = sshll.u32 (!%p466_p3), %s1695_s13, 2  ;;  %s472_s21 = scalar_lea.sflag (!%p466_p3), [#allocation4], %s1695_s13 }
  0x2c   : > { %s475_s15 = scalar_lea.vmem [#allocation3], %s1195_s12 }
  0x2d   : > { %1492 = dma.done.wait (%p1664_p8), %s472_s21, 64  }
  0x2e   : > { %1494 = vsyncadd (%p1664_p8), %s472_s21, 4294967232  ;;  %s482_s11 = scalar_lea.sflag [#allocation7], %s1695_s13  ;;  %s484_s16 = scalar_lea.vmem [#allocation6], %s1695_s13 }
  0x2f   : > { %1496 = dma.done.wait (%p1664_p8), %s482_s11, 16  }
  0x30   : > { %1498 = vsyncadd (%p1664_p8), %s482_s11, 4294967280  ;;  %v1255_v0 = vld [vmem:[%s1870_s2 + $0x8] sm:$0xff]  ;;  %v1254_v1 = vld [vmem:[%s1870_s2] sm:$0xff]  ;;  %vm556_vm0 = vcmask 261120   ;;  %s1527_s25 = smov 104   ;;  %s1528_s20 = smov 120  }
  0x31   : > { %566 = vmatpush.bf16.msra.mxu0 %v1255_v0  ;;  %v1717_v2 = vld [vmem:[%s475_s15] sm:$0xf]  ;;  %v1346_v3 = vld [vmem:[%s1871_s3] ss:$0 sm:$0xff]  ;;  %s1529_s22 = smov 96   ;;  %s1530_s14 = smov 80  }
  0x32   : > { %s1531_s29 = smov 72   ;;  %s1532_s21 = smov 88   ;;  %vm583_vm1 = vcmask 64512   ;;  %v1347_v21 = vld [vmem:[%s484_s16] ss:$0 sm:$0xff]  ;;  %vm620_vm2 = vcmask 1043456  }
  0x33   : > { %s1533_s15 = smov 112   ;;  %s1534_s11 = smov 64   ;;  %vm818_vm3 = vcmask 130048   ;;  %vm820_vm4 = vcmask 195584   ;;  %vm1020_vm13 = vcmask 523264  }
  0x34   : > { %s1535_s16 = smov 40   ;;  %s1536_s23 = smov 56  }
  0x35   : > { %567 = vmatpush.bf16.msra.mxu0 %v1254_v1  ;;  %s1537_s26 = smov 48   ;;  %s1538_s27 = smov 8  }
  0x36   : > { %s1539_s28 = smov 16   ;;  %s1540_s19 = smov 24  }
  0x38   : > { %1205 = vmatmul.msk.bf16.vlgmr.msra.gmra.mxu0 %vm556_vm0, %v1717_v2 }
  0xb5   : > { %v569_v4 = vpop.f32.mrf.mxu0 }
  0xb6   : > { %v570_v5 = vadd.f32 %v1346_v3, %v569_v4 }
  0xb8   : > { %v573_v6 = vpack.c.bf16 %v570_v5, %v570_v5 }
  0xba   : > { %v579_v7 = vunpack.c.l.b16 %v573_v6 }
  0xbc   : > { %v1724_v8 = vpack.c.b16 %v579_v7, %v579_v7 }
  0xbd   : > { %v571_v9 = vpop.f32.mrf.mxu0 }
  0xbe   : > { %749 = vrot.lane.b32.xlu2 %v1724_v8, %s1527_s25  ;;  %637 = vrot.lane.b32.xlu1 %v1724_v8, %s1528_s20  ;;  %s1909_s25 = sld [smem:[#allocation21_spill]] }
  0xbf   : > { %581 = vrot.lane.b32.xlu0 %v1724_v8, %s1529_s22 }
  0xc6   : > { %695 = vrot.lane.b32.xlu2 %v1724_v8, %s1530_s14  ;;  %751 = vrot.lane.b32.xlu1 %v1724_v8, %s1531_s29  ;;  %s1910_s14 = sld [smem:[#allocation22_spill]] }
  0xc7   : > { %639 = vrot.lane.b32.xlu0 %v1724_v8, %s1532_s21 }
  0xcf   : > { %693 = vrot.lane.b32.xlu0 %v1724_v8, %s1533_s15  ;;  %s1911_s15 = sld [smem:[#allocation23_spill]] }
 0x118   : > { %v750_v10 = vpop.permute.xlu2 %749 }
 0x120   : > { %v696_v11 = vpop.permute.xlu2 %695 }
 0x121   : > { %v701_v12 = vsel %vm583_vm1, %v696_v11, 0 }
 0x122   : > { %710 = vmatpush.bf16.xpose.msrb.mxu0 %v701_v12 }
 0x130   : > { %v638_v13 = vpop.permute.xlu1 %637 }
 0x131   : > { %v582_v14 = vpop.permute.xlu0 %581 }
 0x132   : > { %v588_v15 = vsel %vm583_vm1, %v582_v14, 0 }
 0x133   : > { %597 = vmatpush.bf16.xpose.msra.mxu1 %v588_v15 }
 0x138   : > { %v752_v16 = vpop.permute.xlu1 %751 }
 0x139   : > { %v640_v17 = vpop.permute.xlu0 %639  ;;  %v757_v18 = vsel %vm583_vm1, %v752_v16, 0 }
 0x13a   : > { %1206 = vmatmul.msk.bf16.vlgmr.msra.gmra.mxu1 %vm583_vm1, %v573_v6  ;;  %v645_v19 = vsel %vm583_vm1, %v640_v17, 0 }
 0x13b   : > { %654 = vmatpush.bf16.xpose.msra.mxu3 %v645_v19 }
 0x141   : > { %v694_v20 = vpop.permute.xlu0 %693 }
 0x142   : > { %1208 = vmatmul.msk.bf16.vlgmr.msra.gmra.mxu3 %vm583_vm1, %v638_v13  ;;  %1210 = vmatmul.msk.bf16.vlgmr.msrb.gmra.mxu0 %vm583_vm1, %v694_v20 }
 0x143   : > { %766 = vmatpush.bf16.xpose.msrb.mxu3 %v757_v18 }
 0x152   : > { %1212 = vmatmul.msk.bf16.vlgmr.msrb.gmra.mxu3 %vm583_vm1, %v750_v10 }
 0x1b7   : > { %v599_v22 = vpop.f32.mrf.mxu1 }
 0x1b8   : > { %v600_v23 = vadd.f32 %v1347_v21, %v599_v22 }
 0x1ba   : > { %v603_v24 = vsel %vm583_vm1, %v600_v23, -inf }
 0x1bb   : > { %604 = vmax.xlane.f32.xlu1 %v603_v24 }
 0x1bf   : > { %v601_v25 = vpop.f32.mrf.mxu1  ;;  %v712_v26 = vpop.f32.mrf.mxu0 }
 0x1c0   : > { %v713_v31 = vadd.f32 %v1347_v21, %v712_v26 }
 0x1c2   : > { %v716_v33 = vsel %vm583_vm1, %v713_v31, -inf }
 0x1c5   : > { %v656_v27 = vpop.f32.mrf.mxu3 }
 0x1c6   : > { %v657_v28 = vadd.f32 %v1347_v21, %v656_v27  ;;  %v1257_v27 = vld [vmem:[%s1872_s4 + $0x8] sm:$0xff] }
 0x1c7   : > { %v714_v29 = vpop.f32.mrf.mxu0  ;;  %854 = vmatpush.bf16.msra.mxu0 %v1257_v27  ;;  %v1261_v27 = vld [vmem:[%s1878_s10 + $0x8] sm:$0xff] }
 0x1c8   : > { %v660_v30 = vsel %vm583_vm1, %v657_v28, -inf }
 0x1c9   : > { %661 = vmax.xlane.f32.xlu2 %v660_v30 }
 0x1cd   : > { %v658_v32 = vpop.f32.mrf.mxu3 }
 0x1d1   : > { %717 = vmax.xlane.f32.xlu2 %v716_v33 }
 0x1d5   : > { %v768_v34 = vpop.f32.mrf.mxu3 }
 0x1d6   : > { %v769_v35 = vadd.f32 %v1347_v21, %v768_v34 }
 0x1d8   : > { %v772_v36 = vsel %vm583_vm1, %v769_v35, -inf }
 0x1d9   : > { %773 = vmax.xlane.f32.xlu0 %v772_v36 }
 0x1dd   : > { %v770_v37 = vpop.f32.mrf.mxu3 }
 0x1de   : > { %v1348_v37 = vld [vmem:[%s1873_s5] ss:$0 sm:$0xff] }
 0x1e9   : > { %615 = vrot.lane.b32.xlu2 %v1724_v8, %s1534_s11  ;;  %s1912_s11 = smov %s1911_s15 }
 0x1f1   : > { %784 = vrot.lane.b32.xlu2 %v1724_v8, %s1535_s16 }
 0x22e   : > { %v605_v38 = vpop.xlane.xlu1 %604 }
 0x22f   : > { %v606_v39 = vsub.f32 %v600_v23, %v605_v38  ;;  %v861_v38 = vunpack.c.l.bf16 %v1717_v2 }
 0x231   : > { %v607_v40 = vmul.f32 1.442695, %v606_v39 }
 0x233   : > { %1355 = vpow2.f32 %v607_v40 }
 0x239   : > { %v1356_v41 = vpop.eup %1355 }
 0x23a   : > { %v609_v42 = vsel %vm583_vm1, %v1356_v41, 0.0 }
 0x23b   : > { %610 = vadd.xlane.f32.xlu1 %v609_v42 }
 0x23c   : > { %v662_v43 = vpop.xlane.xlu2 %661 }
 0x23d   : > { %v663_v46 = vsub.f32 %v657_v28, %v662_v43  ;;  %v1256_v28 = vld [vmem:[%s1872_s4] sm:$0xff] }
 0x23e   : > { %855 = vmatpush.bf16.msra.mxu0 %v1256_v28 }
 0x23f   : > { %v664_v48 = vmul.f32 1.442695, %v663_v46 }
 0x244   : > { %v718_v44 = vpop.xlane.xlu2 %717 }
 0x245   : > { %v719_v45 = vsub.f32 %v713_v31, %v718_v44  ;;  %v1541_v44 = vmov 32.0  }
 0x247   : > { %v720_v47 = vmul.f32 1.442695, %v719_v45 }
 0x249   : > { %1357 = vpow2.f32 %v720_v47 }
 0x24a   : > { %1359 = vpow2.f32 %v664_v48 }
 0x24c   : > { %v616_v49 = vpop.permute.xlu2 %615  ;;  %v774_v50 = vpop.xlane.xlu0 %773 }
 0x24d   : > { %v622_v51 = vsel %vm620_vm2, %v616_v49, 0  ;;  %v775_v53 = vsub.f32 %v769_v35, %v774_v50 }
 0x24e   : > { %631 = vmatpush.bf16.msra.mxu2 %v622_v51 }
 0x24f   : > { %v1358_v52 = vpop.eup %1357  ;;  %v776_v55 = vmul.f32 1.442695, %v775_v53 }
 0x250   : > { %v722_v54 = vsel %vm583_vm1, %v1358_v52, 0.0  ;;  %v1360_v56 = vpop.eup %1359 }
 0x251   : > { %723 = vadd.xlane.f32.xlu0 %v722_v54  ;;  %1361 = vpow2.f32 %v776_v55  ;;  %v666_v57 = vsel %vm583_vm1, %v1360_v56, 0.0  ;;  %v1259_v55 = vld [vmem:[%s1876_s8 + $0x8] sm:$0xff] }
 0x254   : > { %672 = vrot.lane.b32.xlu1 %v1724_v8, %s1536_s23  ;;  %v785_v1 = vpop.permute.xlu2 %784 }
 0x255   : > { %v790_v5 = vsel %vm620_vm2, %v785_v1, 0 }
 0x257   : > { %v1362_v58 = vpop.eup %1361 }
 0x258   : > { %v778_v59 = vsel %vm583_vm1, %v1362_v58, 0.0 }
 0x259   : > { %667 = vadd.xlane.f32.xlu0 %v666_v57 }
 0x261   : > { %779 = vadd.xlane.f32.xlu0 %v778_v59 }
 0x275   : > { %728 = vrot.lane.b32.xlu0 %v1724_v8, %s1537_s26  ;;  %s1907_s26 = sld [smem:[#allocation20_spill]] }
 0x2ae   : > { %v611_v60 = vpop.xlane.xlu1 %610 }
 0x2af   : > { %1363 = vrcp.f32 %v611_v60 }
 0x2b5   : > { %v1364_v61 = vpop.eup %1363 }
 0x2b6   : > { %v613_v62 = vmul.f32 %v1364_v61, %v1356_v41 }
 0x2b8   : > { %v614_v63 = vpack.c.bf16 %v613_v62, %v613_v62 }
 0x2ba   : > { %1207 = vmatmul.msk.bf16.vlgmr.msra.gmra.mxu2 %vm583_vm1, %v614_v63 }
 0x2c4   : > { %v724_v0 = vpop.xlane.xlu0 %723 }
 0x2c6   : > { %v673_v3 = vpop.permute.xlu1 %672 }
 0x2c7   : > { %v678_v4 = vsel %vm620_vm2, %v673_v3, 0  ;;  %v1349_v3 = vld [vmem:[%s1874_s6] ss:$0 sm:$0xff] }
 0x2c8   : > { %687 = vmatpush.bf16.msrb.mxu2 %v678_v4 }
 0x2cc   : > { %799 = vmatpush.bf16.msra.mxu2 %v790_v5  ;;  %v668_v6 = vpop.xlane.xlu0 %667  ;;  %v1350_v5 = vld [vmem:[%s1875_s7] ss:$0 sm:$0xff] }
 0x2cd   : > { %1365 = vrcp.f32 %v668_v6 }
 0x2d3   : > { %v1366_v7 = vpop.eup %1365 }
 0x2d4   : > { %v670_v8 = vmul.f32 %v1366_v7, %v1360_v56  ;;  %v780_v9 = vpop.xlane.xlu0 %779  ;;  %v1258_v56 = vld [vmem:[%s1876_s8] sm:$0xff] }
 0x2d5   : > { %1367 = vrcp.f32 %v780_v9 }
 0x2d6   : > { %v671_v10 = vpack.c.bf16 %v670_v8, %v670_v8  ;;  %1369 = vrcp.f32 %v724_v0 }
 0x2d7   : > { %1371 = vrcp.f32 %v1541_v44 }
 0x2d8   : > { %1209 = vmatmul.msk.bf16.vlgmr.msrb.gmra.mxu2 %vm583_vm1, %v671_v10  ;;  %v1351_v10 = vld [vmem:[%s1877_s9] ss:$0 sm:$0xff] }
 0x2db   : > { %v1368_v11 = vpop.eup %1367 }
 0x2dc   : > { %v782_v12 = vmul.f32 %v1368_v11, %v1362_v58  ;;  %v1370_v13 = vpop.eup %1369 }
 0x2dd   : > { %v726_v14 = vmul.f32 %v1370_v13, %v1358_v52  ;;  %v1372_v45 = vpop.eup %1371 }
 0x2de   : > { %v783_v15 = vpack.c.bf16 %v782_v12, %v782_v12  ;;  %v869_v46 = vmul.f32 32.0, %v1372_v45  ;;  %vm873_vm5 = vweird.f32 %v1372_v45 }
 0x2df   : > { %v727_v18 = vpack.c.bf16 %v726_v14, %v726_v14 }
 0x2e0   : > { %v870_v47 = vsub.f32 1.0, %v869_v46 }
 0x2e2   : > { %v871_v48 = vmul.f32 %v1372_v45, %v870_v47 }
 0x2e4   : > { %v872_v49 = vadd.f32 %v1372_v45, %v871_v48 }
 0x2e6   : > { %v1777_v50 = vsel %vm873_vm5, %v1372_v45, %v872_v49 }
 0x2e7   : > { %v729_v16 = vpop.permute.xlu0 %728 }
 0x2e8   : > { %1213 = vmatmul.msk.bf16.vlgmr.msra.gmra.mxu2 %vm583_vm1, %v783_v15  ;;  %v734_v17 = vsel %vm620_vm2, %v729_v16, 0 }
 0x2e9   : > { %743 = vmatpush.bf16.msrb.mxu1 %v734_v17  ;;  %v1263_v17 = vld [vmem:[%s1878_s10 + $0x18] sm:$0xff] }
 0x2ea   : > { %1028 = vmatpush.bf16.msra.mxu3 %v1263_v17 }
 0x2ec   : > { %1211 = vmatmul.msk.bf16.vlgmr.msrb.gmra.mxu1 %vm583_vm1, %v727_v18 }
 0x2ed   : > { %932 = vmatpush.bf16.msra.mxu1 %v1259_v55 }
 0x2f1   : > { %933 = vmatpush.bf16.msra.mxu1 %v1258_v56 }
 0x33d   : > { %v633_v19 = vpop.f32.mrf.mxu2 }
 0x345   : > { %v635_v20 = vpop.f32.mrf.mxu2 }
 0x35b   : > { %v689_v21 = vpop.f32.mrf.mxu2 }
 0x35c   : > { %806 = vrot.lane.b32.xlu1 %v689_v21, %s1538_s27  ;;  %s1908_s27 = sld [smem:[#allocation14_spill]] }
 0x363   : > { %v691_v22 = vpop.f32.mrf.mxu2 }
 0x364   : > { %v1262_v22 = vld [vmem:[%s1878_s10 + $0x10] sm:$0xff] }
 0x365   : > { %1029 = vmatpush.bf16.msra.mxu3 %v1262_v22 }
 0x369   : > { %v745_v23 = vpop.f32.mrf.mxu1  ;;  %1030 = vmatpush.bf16.msra.mxu3 %v1261_v27 }
 0x36a   : > { %810 = vrot.lane.b32.xlu2 %v745_v23, %s1539_s28  ;;  %s1251_s28 = sshll.u32 %s1908_s27, 2 }
 0x36b   : > { %v801_v24 = vpop.f32.mrf.mxu2  ;;  %s1085_s16 = scalar_lea.hbm %s1911_s15, %s1251_s28 }
 0x36c   : > { %814 = vrot.lane.b32.xlu1 %v801_v24, %s1540_s19  ;;  %s1089_s0 = sshll.u32 %s1085_s16, 4  ;;  %s1074_s19 = scalar_lea.sflag [#allocation5], %s1695_s13  ;;  %s1090_s0 = int_to_ptr.hbm [resolvable:$true] %s1089_s0 }
 0x36d   : > { %s1453_s24 = sshra.s32 %s1090_s0, 4  ;;  %s1454_s24 = int_to_ptr.hbm [resolvable:$true] %s1453_s24 }
 0x36e   : > { %p1460_p7 = scmp.lt.s32.totalorder %s1454_s24, %s1912_s11 }
 0x371   : > { %v747_v25 = vpop.f32.mrf.mxu1 }
 0x373   : > { %v803_v26 = vpop.f32.mrf.mxu2 }
 0x3c4   : > { %v811_v31 = vpop.permute.xlu2 %810 }
 0x3ce   : > { %v807_v29 = vpop.permute.xlu1 %806 }
 0x3cf   : > { %v817_v30 = vsel %vm583_vm1, %v633_v19, %v807_v29  ;;  %vm1071_vm1 = vcmask 257024  }
 0x3d0   : > { %v819_v33 = vsel %vm818_vm3, %v817_v30, %v811_v31  ;;  %v1260_v31 = vld [vmem:[%s1878_s10] sm:$0xff] }
 0x3d1   : > { %1031 = vmatpush.bf16.msra.mxu3 %v1260_v31 }
 0x3de   : > { %v815_v32 = vpop.permute.xlu1 %814 }
 0x3df   : > { %v821_v34 = vsel %vm820_vm4, %v819_v33, %v815_v32 }
 0x3e0   : > { %822 = vst.msk [vmem:[#allocation2] sm:$0xff] %vm556_vm0, %v821_v34 }
 0x3e7   : > { %v823_v35 = vld [vmem:[#allocation2] sm:$0xff] }
 0x3e8   : > { %v824_v36 = vpack.c.bf16 %v823_v35, %v823_v35 }
 0x3ea   : > { %1222 = vmatmul.msk.bf16.vlgmr.msra.gmra.mxu0 %vm556_vm0, %v824_v36 }
 0x467   : > { %v857_v39 = vpop.f32.mrf.mxu0 }
 0x468   : > { %v858_v40 = vadd.f32 %v1348_v37, %v857_v39 }
 0x46a   : > { %v862_v41 = vadd.f32 %v861_v38, %v858_v40 }
 0x46c   : > { %v865_v42 = vsel %vm556_vm0, %v862_v41, 0.0 }
 0x46d   : > { %866 = vadd.xlane.f32.xlu2 %v865_v42 }
 0x46f   : > { %v859_v43 = vpop.f32.mrf.mxu0 }
 0x4e0   : > { %v867_v51 = vpop.xlane.xlu2 %866 }
 0x4e1   : > { %v875_v2 = vmul.f32 %v1777_v50, %v867_v51 }
 0x4e3   : > { %v876_v52 = vsub.f32 %v862_v41, %v875_v2 }
 0x4e5   : > { %v877_v53 = vmul.f32 %v876_v52, %v876_v52 }
 0x4e7   : > { %v878_v54 = vsel %vm556_vm0, %v877_v53, 0.0 }
 0x4e8   : > { %879 = vadd.xlane.f32.xlu1 %v878_v54 }
 0x55b   : > { %v880_v57 = vpop.xlane.xlu1 %879 }
 0x55c   : > { %v881_v58 = vmul.f32 %v880_v57, %v1777_v50 }
 0x55e   : > { %v882_v59 = vadd.f32 1e-12, %v881_v58  ;;  %v1352_v58 = vld [vmem:[%s1907_s26] ss:$0 sm:$0xff]  ;;  %s533_s26 = scalar_lea.vmem [#allocation8], %s1195_s12  ;;  %s1459_s12 = scalar_lea.hbm %s1912_s11, 8 }
 0x55f   : > { %s1087_s27 = sshll.u32 %s533_s26, 4  ;;  %s1088_s27 = int_to_ptr.vmem [resolvable:$true] %s1087_s27 }
 0x560   : > { %1373 = vrsqrt.f32 %v882_v59  ;;  %vm889_vm7 = vweird.f32 %v882_v59 }
 0x566   : > { %v1374_v60 = vpop.eup %1373 }
 0x567   : > { %v884_v61 = vmul.f32 %v1374_v60, %v882_v59  ;;  %vm890_vm6 = vweird.f32 %v1374_v60 }
 0x568   : > { %vm891_vm8 = vmor %vm889_vm7, %vm890_vm6 }
 0x569   : > { %v885_v62 = vmul.f32 %v1374_v60, %v884_v61 }
 0x56b   : > { %v886_v63 = vmul.f32 0.5, %v885_v62 }
 0x56d   : > { %v887_v0 = vsub.f32 1.5, %v886_v63 }
 0x56f   : > { %v888_v1 = vmul.f32 %v1374_v60, %v887_v0 }
 0x571   : > { %v892_v4 = vsel %vm891_vm8, %v1374_v60, %v888_v1 }
 0x572   : > { %v893_v6 = vmul.f32 %v892_v4, %v876_v52 }
 0x574   : > { %v897_v7 = vmul.f32 %v1349_v3, %v893_v6 }
 0x576   : > { %v1794_v8 = vadd.f32 %v1350_v5, %v897_v7 }
 0x578   : > { %v902_v9 = vpack.c.bf16 %v1794_v8, %v1794_v8 }
 0x57a   : > { %1231 = vmatmul.msk.bf16.vlgmr.msra.gmra.mxu1 %vm556_vm0, %v902_v9 }
 0x5f7   : > { %v935_v11 = vpop.f32.mrf.mxu1 }
 0x5f8   : > { %v936_v12 = vadd.f32 %v1351_v10, %v935_v11 }
 0x5fa   : > { %v940_v13 = vmul.f32 0.70710677, %v936_v12  ;;  %v939_v54 = vmul.f32 0.5, %v936_v12 }
 0x5fc   : > { %v941_v14 = vmul.f32 %v940_v13, %v940_v13 }
 0x5fe   : > { %v942_v15 = vmin.f32 %v941_v14, 16.0 }
 0x5ff   : > { %v937_v16 = vpop.f32.mrf.mxu1 }
 0x600   : > { %v943_v18 = vmul.f32 2.1237322e-06, %v942_v15  ;;  %v954_v19 = vmul.f32 3.8918573e-05, %v942_v15 }
 0x602   : > { %v944_v20 = vadd.f32 0.00028619796, %v943_v18  ;;  %v955_v21 = vadd.f32 0.001143296, %v954_v19 }
 0x604   : > { %v945_v23 = vmul.f32 %v944_v20, %v942_v15  ;;  %v956_v24 = vmul.f32 %v955_v21, %v942_v15 }
 0x606   : > { %v957_v25 = vadd.f32 0.014752088, %v956_v24  ;;  %v946_v26 = vadd.f32 0.0036580483, %v945_v23 }
 0x608   : > { %v958_v28 = vmul.f32 %v957_v25, %v942_v15  ;;  %v947_v30 = vmul.f32 %v946_v26, %v942_v15 }
 0x60a   : > { %v959_v29 = vadd.f32 0.112945676, %v958_v28  ;;  %v948_v34 = vadd.f32 0.05243302, %v947_v30 }
 0x60c   : > { %v960_v32 = vmul.f32 %v959_v29, %v942_v15  ;;  %v949_v37 = vmul.f32 %v948_v34, %v942_v15 }
 0x60e   : > { %v961_v33 = vadd.f32 0.4994258, %v960_v32  ;;  %v950_v38 = vadd.f32 0.18741608, %v949_v37 }
 0x610   : > { %v962_v35 = vmul.f32 %v961_v33, %v942_v15  ;;  %v951_v40 = vmul.f32 %v950_v38, %v942_v15  ;;  %v1353_v15 = vld [vmem:[%s1909_s25] ss:$0 sm:$0xff]  ;;  %s1455_s25 = scalar_lea.hbm %s1454_s24, 4 }
 0x611   : > { %p1456_p4 = scmp.ne.s32.totalorder %s1454_s24, %s1455_s25  ;;  %p1461_p8 = scmp.lt.s32.totalorder %s1459_s12, %s1455_s25 }
 0x612   : > { %v963_v36 = vadd.f32 1.0, %v962_v35  ;;  %v952_v44 = vadd.f32 1.1283791, %v951_v40 }
 0x613   : > { %p1457_p5 = pnand %p1456_p4, %p1668_p9  ;;  %p1462_p10 = por %p1461_p8, %p1460_p7 }
 0x614   : > { %1375 = vrcp.f32 %v963_v36  ;;  %v975_v43 = vand.u32 2147483648, %v963_v36  ;;  %v973_v46 = vand.u32 2147483647, %v963_v36  ;;  %vm969_vm10 = vweird.f32 %v963_v36 }
 0x615   : > { %v953_v49 = vmul.f32 %v952_v44, %v940_v13  ;;  %p1458_p6 = pneg %p1457_p5 }
 0x616   : > { %v976_v48 = vor.u32 1.1754944e-38, %v975_v43  ;;  %vm974_vm12 = vcmp.eq.f32.partialorder %v973_v46, 8.507059e+37 }
 0x617   : > { %p1463_p13 = pnand %p1462_p10, %p1458_p6 }
 0x61a   : > { %v1376_v39 = vpop.eup %1375 }
 0x61b   : > { %v965_v41 = vmul.f32 %v1376_v39, %v963_v36  ;;  %vm970_vm9 = vweird.f32 %v1376_v39 }
 0x61c   : > { %vm971_vm11 = vmor %vm969_vm10, %vm970_vm9 }
 0x61d   : > { %v966_v42 = vsub.f32 1.0, %v965_v41 }
 0x61f   : > { %v967_v45 = vmul.f32 %v1376_v39, %v966_v42 }
 0x621   : > { %v968_v47 = vadd.f32 %v1376_v39, %v967_v45 }
 0x623   : > { %v972_v51 = vsel %vm971_vm11, %v1376_v39, %v968_v47 }
 0x624   : > { %v977_v2 = vsel %vm974_vm12, %v976_v48, %v972_v51 }
 0x625   : > { %v978_v52 = vmul.f32 %v977_v2, %v953_v49 }
 0x627   : > { %v1232_v53 = vclamps-f32 %v978_v52, 1.0 }
 0x629   : > { %v981_v55 = vadd.f32 1.0, %v1232_v53 }
 0x62b   : > { %v982_v56 = vmul.f32 %v981_v55, %v939_v54 }
 0x62d   : > { %v983_v57 = vpack.c.bf16 %v982_v56, %v982_v56 }
 0x62f   : > { %1249 = vmatmul.msk.bf16.vlgmr.msra.gmra.mxu3 %vm1020_vm13, %v983_v57 }
 0x6b2   : > { %v1033_v59 = vpop.f32.mrf.mxu3 }
 0x6b3   : > { %v1034_v60 = vadd.f32 %v1352_v58, %v1033_v59 }
 0x6b5   : > { %v1037_v61 = vadd.f32 %v1034_v60, %v1794_v8 }
 0x6b7   : > { %v1040_v62 = vsel %vm556_vm0, %v1037_v61, 0.0 }
 0x6b8   : > { %1041 = vadd.xlane.f32.xlu0 %v1040_v62 }
 0x6ba   : > { %v1035_v63 = vpop.f32.mrf.mxu3 }
 0x72b   : > { %v1042_v0 = vpop.xlane.xlu0 %1041 }
 0x72c   : > { %v1043_v1 = vmul.f32 %v1042_v0, %v1777_v50 }
 0x72e   : > { %v1044_v3 = vsub.f32 %v1037_v61, %v1043_v1 }
 0x730   : > { %v1045_v4 = vmul.f32 %v1044_v3, %v1044_v3 }
 0x732   : > { %v1046_v5 = vsel %vm556_vm0, %v1045_v4, 0.0 }
 0x733   : > { %1047 = vadd.xlane.f32.xlu2 %v1046_v5 }
 0x7a6   : > { %v1048_v6 = vpop.xlane.xlu2 %1047 }
 0x7a7   : > { %v1049_v7 = vmul.f32 %v1048_v6, %v1777_v50  ;;  %v1354_v50 = vld [vmem:[%s1910_s14] ss:$0 sm:$0xff] }
 0x7a9   : > { %v1050_v9 = vadd.f32 1e-12, %v1049_v7 }
 0x7ab   : > { %1377 = vrsqrt.f32 %v1050_v9  ;;  %vm1057_vm15 = vweird.f32 %v1050_v9 }
 0x7b1   : > { %v1378_v10 = vpop.eup %1377 }
 0x7b2   : > { %v1052_v8 = vmul.f32 %v1378_v10, %v1050_v9  ;;  %vm1058_vm14 = vweird.f32 %v1378_v10 }
 0x7b3   : > { %vm1059_vm0 = vmor %vm1057_vm15, %vm1058_vm14 }
 0x7b4   : > { %v1053_v11 = vmul.f32 %v1378_v10, %v1052_v8 }
 0x7b6   : > { %v1054_v12 = vmul.f32 0.5, %v1053_v11 }
 0x7b8   : > { %v1055_v13 = vsub.f32 1.5, %v1054_v12 }
 0x7ba   : > { %v1056_v14 = vmul.f32 %v1378_v10, %v1055_v13 }
 0x7bc   : > { %v1060_v16 = vsel %vm1059_vm0, %v1378_v10, %v1056_v14 }
 0x7bd   : > { %v1061_v17 = vmul.f32 %v1060_v16, %v1044_v3 }
 0x7bf   : > { %v1065_v18 = vmul.f32 %v1353_v15, %v1061_v17 }
 0x7c1   : > { %v1069_v19 = vadd.f32 %v1354_v50, %v1065_v18 }
 0x7c3   : > { %v1070_v20 = vpack.c.bf16 %v1069_v19, %v1069_v19 }
 0x7c5   : > { %1072 = vst.msk [vmem:[%s533_s26] sm:$0xf] %vm1071_vm1, %v1070_v20 }
 0x7c6   : > { %1466 = shalt.err (!%p1463_p13)
}
 0x7c7   : > { %1268 = dma.vmem_to_hbm [thread:$0]  (%p1668_p9), %s1088_s27, 64, %s1090_s0, %s1074_s19  }
 0x7c8 PF: > { %s1914_s13 = sld [smem:[#allocation12_spill]]  ;;  %p1278_p0 = pnand %p1191_p12, %p1675_p11 }
 0x7ca   : > { %p1279_p1 = pneg %p1278_p0 }
 0x7ce   : > { %s1101_s21 = sand.u32 1, %s1914_s13  }
 0x7cf   : > { %s1102_s15 = scalar_lea.sflag [#allocation5], %s1101_s21 }
 0x7d0   : > { %1500 = dma.done.wait (%p1279_p1), %s1102_s15, 64  }
 0x7d1   : > { %1502 = vsyncadd (%p1279_p1), %s1102_s15, 4294967232  ;;  %s33_s18 = sadd.s32 1, %s1525_s18   ;;  %s1916_s16 = sld [smem:[#allocation13_spill]] }
 0x7d2   : > { %p30_p2 = scmp.ge.s32.totalorder %s33_s18, 4   ;;  %s1917_s15 = sld [smem:[#allocation17_spill]] }
 0x7d3   : > { %s1918_s0 = sld [smem:[#allocation15_spill]]  ;;  %s1919_s29 = smov %s1509_s30 }
 0x7d5   :  { %32 = sbr.rel (!%p30_p2) target bundleno = 14 (0xe), region = 134 }
 0x7d7   : > { %s1920_s30 = smov %s1916_s16  ;;  %s1921_s16 = smov %s1521_s17 }
 0x7d9   : > { %s1922_s17 = smov %s1918_s0 }
 0x7da   :  { %1108 = vsyncpa [#allocation4], 1 }
 0x7db   :  { %1110 = vsyncpa [#allocation4 + $0x1], 1 }
 0x7dc   :  { %1111 = vsyncpa [#allocation7], 1 }
 0x7dd   :  { %1113 = vsyncpa [#allocation7 + $0x1], 1 }
 0x7de   :  { %1114 = vsyncpa [#allocation5], 1 }
 0x7df   :  { %1116 = vsyncpa [#allocation5 + $0x1], 1 }

</bundles_post_ra>
